<compile_context>
chip_gen: v5e
topology: v5e:2x2
jax: 0.10.0
libtpu: 0.0.40
codegen_flags: <defaults>
</compile_context>

<pallas_src>
import jax
import jax.numpy as jnp
from jax.experimental import pallas as pl
from jax.experimental.pallas import tpu as pltpu

FEA_DIM = 128      # fixed by the module: Linear(256, 1) forces size_out == 128
NUM_LAYERS = 5


def mix_fea_kernel(vt_ref, ta_ref, tv_ref, video_ref, comment_ref, user_ref,
                   w1_ref, wa_ref, wb_ref, out_ref):
    bf16 = jnp.bfloat16
    f32 = jnp.float32

    # Per-layer x2 inputs (raw features, in chain order) and the chain seed x1.
    x2s = (vt_ref[...], ta_ref[...], video_ref[...],
           comment_ref[...], user_ref[...])
    x1 = tv_ref[...]

    # Weight slices (w1 already bf16, gating halves f32).
    w1_bf = [w1_ref[i] for i in range(NUM_LAYERS)]                 # (128, 128)
    wa_rows = [wa_ref[i:i + 1, :] for i in range(NUM_LAYERS)]      # (1, 128)
    wb_rows = [wb_ref[i:i + 1, :] for i in range(NUM_LAYERS)]      # (1, 128)

    # ---- off-chain work: h2_i = tanh(x2_i @ W1_i) and its gate-logit term ----
    # These only depend on the raw features, so the MXU can run ahead of the
    # serial tanh/sigmoid/select chain below.
    logit_b = []
    for i in range(NUM_LAYERS):
        h2 = jnp.tanh(jnp.dot(x2s[i].astype(bf16), w1_bf[i],
                              preferred_element_type=f32))
        logit_b.append(jnp.sum(h2 * wb_rows[i], axis=-1, keepdims=True))

    # ---- serial gate chain (5 layers, statically unrolled) -------------------
    outs, scores = [], []
    for i in range(NUM_LAYERS):
        x2 = x2s[i]
        h1 = jnp.tanh(jnp.dot(x1.astype(bf16), w1_bf[i],
                              preferred_element_type=f32))
        logit = jnp.sum(h1 * wa_rows[i], axis=-1, keepdims=True) + logit_b[i]
        z = jax.nn.sigmoid(logit)               # (TB, 1)
        out_i = x2 + z * (x1 - x2)              # == z * x1 + (1 - z) * x2
        outs.append(out_i)
        scores.append(z)
        x1 = out_i

    # ---- softmax over the 5 gate scores, mix the 5 gated outputs -------------
    # scores are sigmoid outputs in (0, 1) -> exp without max-subtraction is safe.
    es = [jnp.exp(s) for s in scores]
    inv = pl.reciprocal(es[0] + es[1] + es[2] + es[3] + es[4], approx=False)
    mix = es[0] * outs[0]
    for e, o in zip(es[1:], outs[1:]):
        mix = mix + e * o
    out_ref[...] = mix * inv


def _tile_config(batch):
    """Generation-aware (batch_tile, vmem_limit_bytes)."""
    vmem_phys = 64 * 1024 * 1024                 # conservative default (v7x)
    try:
        vmem_phys = pltpu.get_tpu_info().vmem_capacity_bytes
    except Exception:
        pass
    if vmem_phys <= 64 * 1024 * 1024:            # v7x: 64 MiB physical per TC
        block_b, vmem_limit = 1024, 48 * 1024 * 1024
    else:                                        # v5e / v6e: 128 MiB physical
        block_b, vmem_limit = 2048, 80 * 1024 * 1024
    if batch <= block_b:
        block_b = batch                          # single full-array block
    return block_b, vmem_limit


def mix_fea_layer(fea_vt, fea_ta, fea_tv, fea_video, fea_comment, fea_user,
                  w1_stack, wa_stack, wb_stack):
    """w1_stack: (5, 128, 128) in (in, out) layout; wa_stack/wb_stack: (5, 128)."""
    B = fea_vt.shape[0]
    block_b, vmem_limit = _tile_config(B)
    nb = pl.cdiv(B, block_b)

    # Pre-cast the matmul weights to bf16 once (tiny, one-time XLA op); keeps
    # the resident VMEM weight slab at ~160 KB and removes the per-tile cast.
    w1_bf16 = w1_stack.astype(jnp.bfloat16)

    fea_spec = pl.BlockSpec((block_b, FEA_DIM), lambda i: (i, 0))
    w1_spec = pl.BlockSpec((NUM_LAYERS, FEA_DIM, FEA_DIM), lambda i: (0, 0, 0))
    wvec_spec = pl.BlockSpec((NUM_LAYERS, FEA_DIM), lambda i: (0, 0))

    cost = pl.CostEstimate(
        flops=2 * 2 * NUM_LAYERS * B * FEA_DIM * FEA_DIM,        # 10 matmuls
        transcendentals=2 * NUM_LAYERS * B * FEA_DIM             # 10 tanh tiles
        + 2 * NUM_LAYERS * B,                                    # sigmoid + exp
        bytes_accessed=7 * B * FEA_DIM * 4
        + NUM_LAYERS * (FEA_DIM * FEA_DIM * 2 + 2 * FEA_DIM * 4),
    )

    return pl.pallas_call(
        mix_fea_kernel,
        out_shape=jax.ShapeDtypeStruct((B, FEA_DIM), jnp.float32),
        grid_spec=pltpu.PrefetchScalarGridSpec(
            num_scalar_prefetch=0,
            grid=(nb,),
            in_specs=[fea_spec] * 6 + [w1_spec, wvec_spec, wvec_spec],
            out_specs=fea_spec,
        ),
        compiler_params=pltpu.CompilerParams(
            dimension_semantics=("parallel",),
            vmem_limit_bytes=vmem_limit,
        ),
        cost_estimate=cost,
    )(fea_vt, fea_ta, fea_tv, fea_video, fea_comment, fea_user,
      w1_bf16, wa_stack, wb_stack)


def mix_fea_layer_ref(fea_vt, fea_ta, fea_tv, fea_video, fea_comment, fea_user,
                      w1_stack, wa_stack, wb_stack, dot_dtype=jnp.float32):
    """Pure-JAX reference mirroring the PyTorch forward.

    dot_dtype=jnp.bfloat16 mirrors the kernel's MXU precision exactly;
    dot_dtype=jnp.float32 is the full-precision PyTorch-equivalent path.
    """
    def mm(x, w):
        return jnp.dot(x.astype(dot_dtype), w.astype(dot_dtype),
                       preferred_element_type=jnp.float32)

    def gru(i, x1, x2):
        h1 = jnp.tanh(mm(x1, w1_stack[i]))
        h2 = jnp.tanh(mm(x2, w1_stack[i]))
        z = jax.nn.sigmoid(
            jnp.sum(h1 * wa_stack[i], axis=-1, keepdims=True)
            + jnp.sum(h2 * wb_stack[i], axis=-1, keepdims=True))
        return z * x1 + (1.0 - z) * x2, z

    out1, s1 = gru(0, fea_tv, fea_vt)
    out2, s2 = gru(1, out1, fea_ta)
    out3, s3 = gru(2, out2, fea_video)
    out4, s4 = gru(3, out3, fea_comment)
    out5, s5 = gru(4, out4, fea_user)
    es = [jnp.exp(s) for s in (s1, s2, s3, s4, s5)]
    e_all = es[0] + es[1] + es[2] + es[3] + es[4]
    outs = (out1, out2, out3, out4, out5)
    return sum((e / e_all) * o for e, o in zip(es, outs))


if __name__ == "__main__":
    key = jax.random.PRNGKey(0)
    B = 8
    keys = jax.random.split(key, 9)

    # 6 input feature tensors, each (B, 128).
    fea_vt = jax.random.normal(keys[0], (B, FEA_DIM), jnp.float32)
    fea_ta = jax.random.normal(keys[1], (B, FEA_DIM), jnp.float32)
    fea_tv = jax.random.normal(keys[2], (B, FEA_DIM), jnp.float32)
    fea_video = jax.random.normal(keys[3], (B, FEA_DIM), jnp.float32)
    fea_comment = jax.random.normal(keys[4], (B, FEA_DIM), jnp.float32)
    fea_user = jax.random.normal(keys[5], (B, FEA_DIM), jnp.float32)

    # Deterministic parameter init (nn.Linear(128,128,bias=False) per layer,
    # stored transposed as (in, out); nn.Linear(256,1,bias=False) split into
    # its two 128-wide halves).
    scale = 1.0 / jnp.sqrt(jnp.float32(FEA_DIM))
    w1_stack = jax.random.uniform(
        keys[6], (NUM_LAYERS, FEA_DIM, FEA_DIM), jnp.float32,
        minval=-scale, maxval=scale)
    scale2 = 1.0 / jnp.sqrt(jnp.float32(2 * FEA_DIM))
    wa_stack = jax.random.uniform(
        keys[7], (NUM_LAYERS, FEA_DIM), jnp.float32, minval=-scale2, maxval=scale2)
    wb_stack = jax.random.uniform(
        keys[8], (NUM_LAYERS, FEA_DIM), jnp.float32, minval=-scale2, maxval=scale2)

    out = mix_fea_layer(fea_vt, fea_ta, fea_tv, fea_video, fea_comment, fea_user,
                        w1_stack, wa_stack, wb_stack)
    out = jax.block_until_ready(out)
    assert out.shape == (B, FEA_DIM)

    # Tight check against a reference that mirrors the kernel's bf16 MXU path.
    ref_bf16 = mix_fea_layer_ref(fea_vt, fea_ta, fea_tv, fea_video, fea_comment,
                                 fea_user, w1_stack, wa_stack, wb_stack,
                                 dot_dtype=jnp.bfloat16)
    assert jnp.allclose(out, ref_bf16, atol=2e-3, rtol=2e-3), \
        "mismatch vs bf16-matmul reference"

    # Loose check against the full-f32 (PyTorch-equivalent) reference; the only
    # difference is the bf16 MXU operand cast.
    ref_f32 = mix_fea_layer_ref(fea_vt, fea_ta, fea_tv, fea_video, fea_comment,
                                fea_user, w1_stack, wa_stack, wb_stack,
                                dot_dtype=jnp.float32)
    assert jnp.allclose(out, ref_f32, atol=5e-2, rtol=5e-2), \
        "mismatch vs f32 reference"

    print("KERNEL_OK")
</pallas_src>

<mosaic_0001>
module attributes {stable_mosaic.version = 11 : i64} {
  func.func @mix_fea_kernel(%arg0: i32, %arg1: memref<8x128xf32, #tpu.memory_space<vmem>>, %arg2: memref<8x128xf32, #tpu.memory_space<vmem>>, %arg3: memref<8x128xf32, #tpu.memory_space<vmem>>, %arg4: memref<8x128xf32, #tpu.memory_space<vmem>>, %arg5: memref<8x128xf32, #tpu.memory_space<vmem>>, %arg6: memref<8x128xf32, #tpu.memory_space<vmem>>, %arg7: memref<5x128x128xbf16, #tpu.memory_space<vmem>>, %arg8: memref<5x128xf32, #tpu.memory_space<vmem>>, %arg9: memref<5x128xf32, #tpu.memory_space<vmem>>, %arg10: memref<8x128xf32, #tpu.memory_space<vmem>>) attributes {dimension_semantics = [#tpu.dimension_semantics<parallel>], iteration_bounds = array<i64: 1>, scalar_prefetch = 0 : i64, scratch_operands = 0 : i64, tpu.core_type = #tpu.core_type<tc>, window_params = [{transform_indices = @transform_0, window_bounds = array<i64: 8, 128>}, {transform_indices = @transform_1, window_bounds = array<i64: 8, 128>}, {transform_indices = @transform_2, window_bounds = array<i64: 8, 128>}, {transform_indices = @transform_3, window_bounds = array<i64: 8, 128>}, {transform_indices = @transform_4, window_bounds = array<i64: 8, 128>}, {transform_indices = @transform_5, window_bounds = array<i64: 8, 128>}, {pipeline_mode = #tpu.pipeline_mode<synchronous>, transform_indices = @transform_6, window_bounds = array<i64: 5, 128, 128>}, {pipeline_mode = #tpu.pipeline_mode<synchronous>, transform_indices = @transform_7, window_bounds = array<i64: 5, 128>}, {pipeline_mode = #tpu.pipeline_mode<synchronous>, transform_indices = @transform_8, window_bounds = array<i64: 5, 128>}, {transform_indices = @transform_9, window_bounds = array<i64: 8, 128>}]} {
    %c0 = arith.constant 0 : index
    %c0_0 = arith.constant 0 : index
    %0 = vector.load %arg1[%c0, %c0_0] : memref<8x128xf32, #tpu.memory_space<vmem>>, vector<8x128xf32>
    %c0_1 = arith.constant 0 : index
    %c0_2 = arith.constant 0 : index
    %1 = vector.load %arg2[%c0_1, %c0_2] : memref<8x128xf32, #tpu.memory_space<vmem>>, vector<8x128xf32>
    %c0_3 = arith.constant 0 : index
    %c0_4 = arith.constant 0 : index
    %2 = vector.load %arg4[%c0_3, %c0_4] : memref<8x128xf32, #tpu.memory_space<vmem>>, vector<8x128xf32>
    %c0_5 = arith.constant 0 : index
    %c0_6 = arith.constant 0 : index
    %3 = vector.load %arg5[%c0_5, %c0_6] : memref<8x128xf32, #tpu.memory_space<vmem>>, vector<8x128xf32>
    %c0_7 = arith.constant 0 : index
    %c0_8 = arith.constant 0 : index
    %4 = vector.load %arg6[%c0_7, %c0_8] : memref<8x128xf32, #tpu.memory_space<vmem>>, vector<8x128xf32>
    %c0_9 = arith.constant 0 : index
    %c0_10 = arith.constant 0 : index
    %5 = vector.load %arg3[%c0_9, %c0_10] : memref<8x128xf32, #tpu.memory_space<vmem>>, vector<8x128xf32>
    %c0_11 = arith.constant 0 : index
    %c0_12 = arith.constant 0 : index
    %c0_13 = arith.constant 0 : index
    %6 = vector.load %arg7[%c0_11, %c0_12, %c0_13] : memref<5x128x128xbf16, #tpu.memory_space<vmem>>, vector<1x128x128xbf16>
    %7 = vector.shape_cast %6 : vector<1x128x128xbf16> to vector<128x128xbf16>
    %c1 = arith.constant 1 : index
    %c0_14 = arith.constant 0 : index
    %c0_15 = arith.constant 0 : index
    %8 = vector.load %arg7[%c1, %c0_14, %c0_15] : memref<5x128x128xbf16, #tpu.memory_space<vmem>>, vector<1x128x128xbf16>
    %9 = vector.shape_cast %8 : vector<1x128x128xbf16> to vector<128x128xbf16>
    %c2 = arith.constant 2 : index
    %c0_16 = arith.constant 0 : index
    %c0_17 = arith.constant 0 : index
    %10 = vector.load %arg7[%c2, %c0_16, %c0_17] : memref<5x128x128xbf16, #tpu.memory_space<vmem>>, vector<1x128x128xbf16>
    %11 = vector.shape_cast %10 : vector<1x128x128xbf16> to vector<128x128xbf16>
    %c3 = arith.constant 3 : index
    %c0_18 = arith.constant 0 : index
    %c0_19 = arith.constant 0 : index
    %12 = vector.load %arg7[%c3, %c0_18, %c0_19] : memref<5x128x128xbf16, #tpu.memory_space<vmem>>, vector<1x128x128xbf16>
    %13 = vector.shape_cast %12 : vector<1x128x128xbf16> to vector<128x128xbf16>
    %c4 = arith.constant 4 : index
    %c0_20 = arith.constant 0 : index
    %c0_21 = arith.constant 0 : index
    %14 = vector.load %arg7[%c4, %c0_20, %c0_21] : memref<5x128x128xbf16, #tpu.memory_space<vmem>>, vector<1x128x128xbf16>
    %15 = vector.shape_cast %14 : vector<1x128x128xbf16> to vector<128x128xbf16>
    %c0_22 = arith.constant 0 : index
    %c0_23 = arith.constant 0 : index
    %16 = vector.load %arg8[%c0_22, %c0_23] : memref<5x128xf32, #tpu.memory_space<vmem>>, vector<1x128xf32>
    %c1_24 = arith.constant 1 : index
    %c0_25 = arith.constant 0 : index
    %17 = vector.load %arg8[%c1_24, %c0_25] : memref<5x128xf32, #tpu.memory_space<vmem>>, vector<1x128xf32>
    %c2_26 = arith.constant 2 : index
    %c0_27 = arith.constant 0 : index
    %18 = vector.load %arg8[%c2_26, %c0_27] : memref<5x128xf32, #tpu.memory_space<vmem>>, vector<1x128xf32>
    %c3_28 = arith.constant 3 : index
    %c0_29 = arith.constant 0 : index
    %19 = vector.load %arg8[%c3_28, %c0_29] : memref<5x128xf32, #tpu.memory_space<vmem>>, vector<1x128xf32>
    %c4_30 = arith.constant 4 : index
    %c0_31 = arith.constant 0 : index
    %20 = vector.load %arg8[%c4_30, %c0_31] : memref<5x128xf32, #tpu.memory_space<vmem>>, vector<1x128xf32>
    %c0_32 = arith.constant 0 : index
    %c0_33 = arith.constant 0 : index
    %21 = vector.load %arg9[%c0_32, %c0_33] : memref<5x128xf32, #tpu.memory_space<vmem>>, vector<1x128xf32>
    %c1_34 = arith.constant 1 : index
    %c0_35 = arith.constant 0 : index
    %22 = vector.load %arg9[%c1_34, %c0_35] : memref<5x128xf32, #tpu.memory_space<vmem>>, vector<1x128xf32>
    %c2_36 = arith.constant 2 : index
    %c0_37 = arith.constant 0 : index
    %23 = vector.load %arg9[%c2_36, %c0_37] : memref<5x128xf32, #tpu.memory_space<vmem>>, vector<1x128xf32>
    %c3_38 = arith.constant 3 : index
    %c0_39 = arith.constant 0 : index
    %24 = vector.load %arg9[%c3_38, %c0_39] : memref<5x128xf32, #tpu.memory_space<vmem>>, vector<1x128xf32>
    %c4_40 = arith.constant 4 : index
    %c0_41 = arith.constant 0 : index
    %25 = vector.load %arg9[%c4_40, %c0_41] : memref<5x128xf32, #tpu.memory_space<vmem>>, vector<1x128xf32>
    %26 = arith.truncf %0 : vector<8x128xf32> to vector<8x128xbf16>
    %cst = arith.constant dense<0.000000e+00> : vector<8x128xf32>
    %27 = tpu.matmul %26, %7, %cst {dimension_numbers = #tpu.dot_dimension_numbers<[1], [0], [0], [1], [0, 0, 1, 1], [], []>} : vector<8x128xbf16>, vector<128x128xbf16>, vector<8x128xf32> -> vector<8x128xf32>
    %28 = math.tanh %27 : vector<8x128xf32>
    %29 = vector.broadcast %21 : vector<1x128xf32> to vector<8x128xf32>
    %30 = arith.mulf %28, %29 : vector<8x128xf32>
    %cst_42 = arith.constant dense<0.000000e+00> : vector<8xf32>
    %31 = vector.multi_reduction <add>, %30, %cst_42 [1] : vector<8x128xf32> to vector<8xf32>
    %32 = vector.shape_cast %31 : vector<8xf32> to vector<8x1xf32>
    %33 = arith.truncf %1 : vector<8x128xf32> to vector<8x128xbf16>
    %cst_43 = arith.constant dense<0.000000e+00> : vector<8x128xf32>
    %34 = tpu.matmul %33, %9, %cst_43 {dimension_numbers = #tpu.dot_dimension_numbers<[1], [0], [0], [1], [0, 0, 1, 1], [], []>} : vector<8x128xbf16>, vector<128x128xbf16>, vector<8x128xf32> -> vector<8x128xf32>
    %35 = math.tanh %34 : vector<8x128xf32>
    %36 = vector.broadcast %22 : vector<1x128xf32> to vector<8x128xf32>
    %37 = arith.mulf %35, %36 : vector<8x128xf32>
    %cst_44 = arith.constant dense<0.000000e+00> : vector<8xf32>
    %38 = vector.multi_reduction <add>, %37, %cst_44 [1] : vector<8x128xf32> to vector<8xf32>
    %39 = vector.shape_cast %38 : vector<8xf32> to vector<8x1xf32>
    %40 = arith.truncf %2 : vector<8x128xf32> to vector<8x128xbf16>
    %cst_45 = arith.constant dense<0.000000e+00> : vector<8x128xf32>
    %41 = tpu.matmul %40, %11, %cst_45 {dimension_numbers = #tpu.dot_dimension_numbers<[1], [0], [0], [1], [0, 0, 1, 1], [], []>} : vector<8x128xbf16>, vector<128x128xbf16>, vector<8x128xf32> -> vector<8x128xf32>
    %42 = math.tanh %41 : vector<8x128xf32>
    %43 = vector.broadcast %23 : vector<1x128xf32> to vector<8x128xf32>
    %44 = arith.mulf %42, %43 : vector<8x128xf32>
    %cst_46 = arith.constant dense<0.000000e+00> : vector<8xf32>
    %45 = vector.multi_reduction <add>, %44, %cst_46 [1] : vector<8x128xf32> to vector<8xf32>
    %46 = vector.shape_cast %45 : vector<8xf32> to vector<8x1xf32>
    %47 = arith.truncf %3 : vector<8x128xf32> to vector<8x128xbf16>
    %cst_47 = arith.constant dense<0.000000e+00> : vector<8x128xf32>
    %48 = tpu.matmul %47, %13, %cst_47 {dimension_numbers = #tpu.dot_dimension_numbers<[1], [0], [0], [1], [0, 0, 1, 1], [], []>} : vector<8x128xbf16>, vector<128x128xbf16>, vector<8x128xf32> -> vector<8x128xf32>
    %49 = math.tanh %48 : vector<8x128xf32>
    %50 = vector.broadcast %24 : vector<1x128xf32> to vector<8x128xf32>
    %51 = arith.mulf %49, %50 : vector<8x128xf32>
    %cst_48 = arith.constant dense<0.000000e+00> : vector<8xf32>
    %52 = vector.multi_reduction <add>, %51, %cst_48 [1] : vector<8x128xf32> to vector<8xf32>
    %53 = vector.shape_cast %52 : vector<8xf32> to vector<8x1xf32>
    %54 = arith.truncf %4 : vector<8x128xf32> to vector<8x128xbf16>
    %cst_49 = arith.constant dense<0.000000e+00> : vector<8x128xf32>
    %55 = tpu.matmul %54, %15, %cst_49 {dimension_numbers = #tpu.dot_dimension_numbers<[1], [0], [0], [1], [0, 0, 1, 1], [], []>} : vector<8x128xbf16>, vector<128x128xbf16>, vector<8x128xf32> -> vector<8x128xf32>
    %56 = math.tanh %55 : vector<8x128xf32>
    %57 = vector.broadcast %25 : vector<1x128xf32> to vector<8x128xf32>
    %58 = arith.mulf %56, %57 : vector<8x128xf32>
    %cst_50 = arith.constant dense<0.000000e+00> : vector<8xf32>
    %59 = vector.multi_reduction <add>, %58, %cst_50 [1] : vector<8x128xf32> to vector<8xf32>
    %60 = vector.shape_cast %59 : vector<8xf32> to vector<8x1xf32>
    %61 = arith.truncf %5 : vector<8x128xf32> to vector<8x128xbf16>
    %cst_51 = arith.constant dense<0.000000e+00> : vector<8x128xf32>
    %62 = tpu.matmul %61, %7, %cst_51 {dimension_numbers = #tpu.dot_dimension_numbers<[1], [0], [0], [1], [0, 0, 1, 1], [], []>} : vector<8x128xbf16>, vector<128x128xbf16>, vector<8x128xf32> -> vector<8x128xf32>
    %63 = math.tanh %62 : vector<8x128xf32>
    %64 = vector.broadcast %16 : vector<1x128xf32> to vector<8x128xf32>
    %65 = arith.mulf %63, %64 : vector<8x128xf32>
    %cst_52 = arith.constant dense<0.000000e+00> : vector<8xf32>
    %66 = vector.multi_reduction <add>, %65, %cst_52 [1] : vector<8x128xf32> to vector<8xf32>
    %67 = vector.shape_cast %66 : vector<8xf32> to vector<8x1xf32>
    %68 = arith.addf %67, %32 : vector<8x1xf32>
    %69 = arith.negf %68 : vector<8x1xf32>
    %70 = math.exp %69 : vector<8x1xf32>
    %cst_53 = arith.constant 1.000000e+00 : f32
    %71 = vector.broadcast %cst_53 : f32 to vector<8x1xf32>
    %72 = arith.addf %71, %70 : vector<8x1xf32>
    %73 = arith.divf %71, %72 : vector<8x1xf32>
    %74 = arith.subf %5, %0 : vector<8x128xf32>
    %75 = vector.broadcast %73 : vector<8x1xf32> to vector<8x128xf32>
    %76 = arith.mulf %75, %74 : vector<8x128xf32>
    %77 = arith.addf %0, %76 : vector<8x128xf32>
    %78 = arith.truncf %77 : vector<8x128xf32> to vector<8x128xbf16>
    %cst_54 = arith.constant dense<0.000000e+00> : vector<8x128xf32>
    %79 = tpu.matmul %78, %9, %cst_54 {dimension_numbers = #tpu.dot_dimension_numbers<[1], [0], [0], [1], [0, 0, 1, 1], [], []>} : vector<8x128xbf16>, vector<128x128xbf16>, vector<8x128xf32> -> vector<8x128xf32>
    %80 = math.tanh %79 : vector<8x128xf32>
    %81 = vector.broadcast %17 : vector<1x128xf32> to vector<8x128xf32>
    %82 = arith.mulf %80, %81 : vector<8x128xf32>
    %cst_55 = arith.constant dense<0.000000e+00> : vector<8xf32>
    %83 = vector.multi_reduction <add>, %82, %cst_55 [1] : vector<8x128xf32> to vector<8xf32>
    %84 = vector.shape_cast %83 : vector<8xf32> to vector<8x1xf32>
    %85 = arith.addf %84, %39 : vector<8x1xf32>
    %86 = arith.negf %85 : vector<8x1xf32>
    %87 = math.exp %86 : vector<8x1xf32>
    %cst_56 = arith.constant 1.000000e+00 : f32
    %88 = vector.broadcast %cst_56 : f32 to vector<8x1xf32>
    %89 = arith.addf %88, %87 : vector<8x1xf32>
    %90 = arith.divf %88, %89 : vector<8x1xf32>
    %91 = arith.subf %77, %1 : vector<8x128xf32>
    %92 = vector.broadcast %90 : vector<8x1xf32> to vector<8x128xf32>
    %93 = arith.mulf %92, %91 : vector<8x128xf32>
    %94 = arith.addf %1, %93 : vector<8x128xf32>
    %95 = arith.truncf %94 : vector<8x128xf32> to vector<8x128xbf16>
    %cst_57 = arith.constant dense<0.000000e+00> : vector<8x128xf32>
    %96 = tpu.matmul %95, %11, %cst_57 {dimension_numbers = #tpu.dot_dimension_numbers<[1], [0], [0], [1], [0, 0, 1, 1], [], []>} : vector<8x128xbf16>, vector<128x128xbf16>, vector<8x128xf32> -> vector<8x128xf32>
    %97 = math.tanh %96 : vector<8x128xf32>
    %98 = vector.broadcast %18 : vector<1x128xf32> to vector<8x128xf32>
    %99 = arith.mulf %97, %98 : vector<8x128xf32>
    %cst_58 = arith.constant dense<0.000000e+00> : vector<8xf32>
    %100 = vector.multi_reduction <add>, %99, %cst_58 [1] : vector<8x128xf32> to vector<8xf32>
    %101 = vector.shape_cast %100 : vector<8xf32> to vector<8x1xf32>
    %102 = arith.addf %101, %46 : vector<8x1xf32>
    %103 = arith.negf %102 : vector<8x1xf32>
    %104 = math.exp %103 : vector<8x1xf32>
    %cst_59 = arith.constant 1.000000e+00 : f32
    %105 = vector.broadcast %cst_59 : f32 to vector<8x1xf32>
    %106 = arith.addf %105, %104 : vector<8x1xf32>
    %107 = arith.divf %105, %106 : vector<8x1xf32>
    %108 = arith.subf %94, %2 : vector<8x128xf32>
    %109 = vector.broadcast %107 : vector<8x1xf32> to vector<8x128xf32>
    %110 = arith.mulf %109, %108 : vector<8x128xf32>
    %111 = arith.addf %2, %110 : vector<8x128xf32>
    %112 = arith.truncf %111 : vector<8x128xf32> to vector<8x128xbf16>
    %cst_60 = arith.constant dense<0.000000e+00> : vector<8x128xf32>
    %113 = tpu.matmul %112, %13, %cst_60 {dimension_numbers = #tpu.dot_dimension_numbers<[1], [0], [0], [1], [0, 0, 1, 1], [], []>} : vector<8x128xbf16>, vector<128x128xbf16>, vector<8x128xf32> -> vector<8x128xf32>
    %114 = math.tanh %113 : vector<8x128xf32>
    %115 = vector.broadcast %19 : vector<1x128xf32> to vector<8x128xf32>
    %116 = arith.mulf %114, %115 : vector<8x128xf32>
    %cst_61 = arith.constant dense<0.000000e+00> : vector<8xf32>
    %117 = vector.multi_reduction <add>, %116, %cst_61 [1] : vector<8x128xf32> to vector<8xf32>
    %118 = vector.shape_cast %117 : vector<8xf32> to vector<8x1xf32>
    %119 = arith.addf %118, %53 : vector<8x1xf32>
    %120 = arith.negf %119 : vector<8x1xf32>
    %121 = math.exp %120 : vector<8x1xf32>
    %cst_62 = arith.constant 1.000000e+00 : f32
    %122 = vector.broadcast %cst_62 : f32 to vector<8x1xf32>
    %123 = arith.addf %122, %121 : vector<8x1xf32>
    %124 = arith.divf %122, %123 : vector<8x1xf32>
    %125 = arith.subf %111, %3 : vector<8x128xf32>
    %126 = vector.broadcast %124 : vector<8x1xf32> to vector<8x128xf32>
    %127 = arith.mulf %126, %125 : vector<8x128xf32>
    %128 = arith.addf %3, %127 : vector<8x128xf32>
    %129 = arith.truncf %128 : vector<8x128xf32> to vector<8x128xbf16>
    %cst_63 = arith.constant dense<0.000000e+00> : vector<8x128xf32>
    %130 = tpu.matmul %129, %15, %cst_63 {dimension_numbers = #tpu.dot_dimension_numbers<[1], [0], [0], [1], [0, 0, 1, 1], [], []>} : vector<8x128xbf16>, vector<128x128xbf16>, vector<8x128xf32> -> vector<8x128xf32>
    %131 = math.tanh %130 : vector<8x128xf32>
    %132 = vector.broadcast %20 : vector<1x128xf32> to vector<8x128xf32>
    %133 = arith.mulf %131, %132 : vector<8x128xf32>
    %cst_64 = arith.constant dense<0.000000e+00> : vector<8xf32>
    %134 = vector.multi_reduction <add>, %133, %cst_64 [1] : vector<8x128xf32> to vector<8xf32>
    %135 = vector.shape_cast %134 : vector<8xf32> to vector<8x1xf32>
    %136 = arith.addf %135, %60 : vector<8x1xf32>
    %137 = arith.negf %136 : vector<8x1xf32>
    %138 = math.exp %137 : vector<8x1xf32>
    %cst_65 = arith.constant 1.000000e+00 : f32
    %139 = vector.broadcast %cst_65 : f32 to vector<8x1xf32>
    %140 = arith.addf %139, %138 : vector<8x1xf32>
    %141 = arith.divf %139, %140 : vector<8x1xf32>
    %142 = arith.subf %128, %4 : vector<8x128xf32>
    %143 = vector.broadcast %141 : vector<8x1xf32> to vector<8x128xf32>
    %144 = arith.mulf %143, %142 : vector<8x128xf32>
    %145 = arith.addf %4, %144 : vector<8x128xf32>
    %146 = math.exp %73 : vector<8x1xf32>
    %147 = math.exp %90 : vector<8x1xf32>
    %148 = math.exp %107 : vector<8x1xf32>
    %149 = math.exp %124 : vector<8x1xf32>
    %150 = math.exp %141 : vector<8x1xf32>
    %151 = arith.addf %146, %147 : vector<8x1xf32>
    %152 = arith.addf %151, %148 : vector<8x1xf32>
    %153 = arith.addf %152, %149 : vector<8x1xf32>
    %154 = arith.addf %153, %150 : vector<8x1xf32>
    %155 = tpu.reciprocal %154 : vector<8x1xf32> -> vector<8x1xf32>
    %156 = vector.broadcast %146 : vector<8x1xf32> to vector<8x128xf32>
    %157 = arith.mulf %156, %77 : vector<8x128xf32>
    %158 = vector.broadcast %147 : vector<8x1xf32> to vector<8x128xf32>
    %159 = arith.mulf %158, %94 : vector<8x128xf32>
    %160 = arith.addf %157, %159 : vector<8x128xf32>
    %161 = vector.broadcast %148 : vector<8x1xf32> to vector<8x128xf32>
    %162 = arith.mulf %161, %111 : vector<8x128xf32>
    %163 = arith.addf %160, %162 : vector<8x128xf32>
    %164 = vector.broadcast %149 : vector<8x1xf32> to vector<8x128xf32>
    %165 = arith.mulf %164, %128 : vector<8x128xf32>
    %166 = arith.addf %163, %165 : vector<8x128xf32>
    %167 = vector.broadcast %150 : vector<8x1xf32> to vector<8x128xf32>
    %168 = arith.mulf %167, %145 : vector<8x128xf32>
    %169 = arith.addf %166, %168 : vector<8x128xf32>
    %170 = vector.broadcast %155 : vector<8x1xf32> to vector<8x128xf32>
    %171 = arith.mulf %169, %170 : vector<8x128xf32>
    %c0_66 = arith.constant 0 : index
    %c0_67 = arith.constant 0 : index
    %172 = vector.load %arg10[%c0_66, %c0_67] : memref<8x128xf32, #tpu.memory_space<vmem>>, vector<8x128xf32>
    tpu.vector_store %arg10[%c0_66, %c0_67], %171 {strides = array<i32>} : memref<8x128xf32, #tpu.memory_space<vmem>>, vector<8x128xf32>,
    return
  }
  func.func @transform_0(%arg0: i32) -> (i32, i32) {
    %c0_i32 = arith.constant 0 : i32
    %c0_i32_0 = arith.constant 0 : i32
    return %arg0, %c0_i32 : i32, i32
  }
  func.func @transform_1(%arg0: i32) -> (i32, i32) {
    %c0_i32 = arith.constant 0 : i32
    %c0_i32_0 = arith.constant 0 : i32
    return %arg0, %c0_i32 : i32, i32
  }
  func.func @transform_2(%arg0: i32) -> (i32, i32) {
    %c0_i32 = arith.constant 0 : i32
    %c0_i32_0 = arith.constant 0 : i32
    return %arg0, %c0_i32 : i32, i32
  }
  func.func @transform_3(%arg0: i32) -> (i32, i32) {
    %c0_i32 = arith.constant 0 : i32
    %c0_i32_0 = arith.constant 0 : i32
    return %arg0, %c0_i32 : i32, i32
  }
  func.func @transform_4(%arg0: i32) -> (i32, i32) {
    %c0_i32 = arith.constant 0 : i32
    %c0_i32_0 = arith.constant 0 : i32
    return %arg0, %c0_i32 : i32, i32
  }
  func.func @transform_5(%arg0: i32) -> (i32, i32) {
    %c0_i32 = arith.constant 0 : i32
    %c0_i32_0 = arith.constant 0 : i32
    return %arg0, %c0_i32 : i32, i32
  }
  func.func @transform_6(%arg0: i32) -> (i32, i32, i32) {
    %c0_i32 = arith.constant 0 : i32
    %c0_i32_0 = arith.constant 0 : i32
    %c0_i32_1 = arith.constant 0 : i32
    %c0_i32_2 = arith.constant 0 : i32
    return %c0_i32, %c0_i32_0, %c0_i32_1 : i32, i32, i32
  }
  func.func @transform_7(%arg0: i32) -> (i32, i32) {
    %c0_i32 = arith.constant 0 : i32
    %c0_i32_0 = arith.constant 0 : i32
    %c0_i32_1 = arith.constant 0 : i32
    return %c0_i32, %c0_i32_0 : i32, i32
  }
  func.func @transform_8(%arg0: i32) -> (i32, i32) {
    %c0_i32 = arith.constant 0 : i32
    %c0_i32_0 = arith.constant 0 : i32
    %c0_i32_1 = arith.constant 0 : i32
    return %c0_i32, %c0_i32_0 : i32, i32
  }
  func.func @transform_9(%arg0: i32) -> (i32, i32) {
    %c0_i32 = arith.constant 0 : i32
    %c0_i32_0 = arith.constant 0 : i32
    return %arg0, %c0_i32 : i32, i32
  }
}

</mosaic_0001>

<bundles_post_ra>
// kernel: tpu_custom_call.1
= control target key start
LH: loop header
LB: loop body
LE: loop exit
PB: predicated region body
PF: predicated region fallthrough
CT: control target
= control target key end

     0   :  { %14 = vsyncpa [#allocation3], 0  ;;  %s1641_s0 = inlined_call_operand.hbm [shape: f32[8,128], index: 0, kind: input, shape index: {}]   ;;  %s1642_s1 = inlined_call_operand.hbm [shape: f32[8,128], index: 1, kind: input, shape index: {}]   ;;  %s1643_s2 = inlined_call_operand.hbm [shape: f32[8,128], index: 2, kind: input, shape index: {}]   ;;  %s1644_s3 = inlined_call_operand.hbm [shape: f32[8,128], index: 3, kind: input, shape index: {}]   ;;  %s1645_s4 = inlined_call_operand.hbm [shape: f32[8,128], index: 4, kind: input, shape index: {}]   ;;  %s1646_s5 = inlined_call_operand.hbm [shape: f32[8,128], index: 5, kind: input, shape index: {}]   ;;  %s1647_s6 = inlined_call_operand.hbm [shape: bf16[5,128,128], index: 6, kind: input, shape index: {}]   ;;  %s1648_s7 = inlined_call_operand.hbm [shape: f32[5,128], index: 7, kind: input, shape index: {}]   ;;  %s1649_s8 = inlined_call_operand.hbm [shape: f32[5,128], index: 8, kind: input, shape index: {}]   ;;  %s1650_s9 = inlined_call_operand.hbm [shape: f32[8,128], index: 9, kind: output, shape index: {}]  }
   0x1   :  { %15 = vsyncpa [#allocation6], 0 }
   0x2   :  { %16 = vsyncpa [#allocation9], 0 }
   0x3   :  { %17 = vsyncpa [#allocation12], 0 }
   0x4   :  { %18 = vsyncpa [#allocation15], 0  ;;  %s36_s11 = sshll.u32 %s1642_s1, 4  ;;  %s37_s11 = int_to_ptr.hbm [resolvable:$true] %s36_s11 }
   0x5   :  { %19 = vsyncpa [#allocation4], 0  ;;  %s1393_s12 = smov [#allocation5]   ;;  %s58_s16 = sshll.u32 %s1644_s3, 4  ;;  %s59_s16 = int_to_ptr.hbm [resolvable:$true] %s58_s16 }
   0x6   :  { %s38_s13 = sshll.u32 %s1393_s12, 4  ;;  %s1394_s17 = smov [#allocation8]   ;;  %s39_s13 = int_to_ptr.vmem [resolvable:$true] %s38_s13 }
   0x7   :  { %41 = dma.hbm_to_vmem [thread:$0]  %s37_s11, 128, %s39_s13, [#allocation6]  }
   0x8   :  { %s60_s18 = sshll.u32 %s1394_s17, 4  ;;  %s80_s21 = sshll.u32 %s1646_s5, 4  ;;  %s61_s18 = int_to_ptr.vmem [resolvable:$true] %s60_s18  ;;  %s81_s21 = int_to_ptr.hbm [resolvable:$true] %s80_s21 }
   0x9   :  { %63 = dma.hbm_to_vmem [thread:$0]  %s59_s16, 128, %s61_s18, [#allocation9]  }
   0xa   :  { %s104_s23 = sshll.u32 %s1648_s7, 4  ;;  %s1395_s24 = smov [#allocation11]   ;;  %s105_s23 = int_to_ptr.hbm [resolvable:$true] %s104_s23 }
   0xb   :  { %s82_s25 = sshll.u32 %s1395_s24, 4  ;;  %s1396_s3 = smov [#allocation14]   ;;  %s83_s25 = int_to_ptr.vmem [resolvable:$true] %s82_s25 }
   0xc   :  { %85 = dma.hbm_to_vmem [thread:$0]  %s81_s21, 128, %s83_s25, [#allocation12]  }
   0xd   :  { %s106_s26 = sshll.u32 %s1396_s3, 4  ;;  %s25_s29 = sshll.u32 %s1641_s0, 4  ;;  %s107_s26 = int_to_ptr.vmem [resolvable:$true] %s106_s26  ;;  %s26_s29 = int_to_ptr.hbm [resolvable:$true] %s25_s29 }
   0xe   :  { %109 = dma.hbm_to_vmem [thread:$0]  %s105_s23, 128, %s107_s26, [#allocation15]  }
   0xf   :  { %s47_s10 = sshll.u32 %s1643_s2, 4  ;;  %s1397_s11 = smov [#allocation2]   ;;  %s48_s10 = int_to_ptr.hbm [resolvable:$true] %s47_s10 }
  0x10   :  { %s27_s7 = sshll.u32 %s1397_s11, 4  ;;  %s1398_s12 = smov [#allocation7]   ;;  %s28_s7 = int_to_ptr.vmem [resolvable:$true] %s27_s7 }
  0x11   :  { %30 = dma.hbm_to_vmem [thread:$0]  %s26_s29, 128, %s28_s7, [#allocation3]  }
  0x12   :  { %s49_s13 = sshll.u32 %s1398_s12, 4  ;;  %s69_s16 = sshll.u32 %s1645_s4, 4  ;;  %s50_s13 = int_to_ptr.vmem [resolvable:$true] %s49_s13  ;;  %s70_s16 = int_to_ptr.hbm [resolvable:$true] %s69_s16 }
  0x13   :  { %52 = dma.hbm_to_vmem [thread:$0]  %s48_s10, 128, %s50_s13, [#allocation6]  }
  0x14   :  { %s90_s18 = sshll.u32 %s1647_s6, 4  ;;  %s1399_s19 = smov [#allocation10]   ;;  %s91_s18 = int_to_ptr.hbm [resolvable:$true] %s90_s18 }
  0x15   :  { %s71_s2 = sshll.u32 %s1399_s19, 4  ;;  %s1400_s20 = smov [#allocation13]   ;;  %s72_s2 = int_to_ptr.vmem [resolvable:$true] %s71_s2 }
  0x16   :  { %74 = dma.hbm_to_vmem [thread:$0]  %s70_s16, 128, %s72_s2, [#allocation9]  }
  0x17   :  { %s92_s21 = sshll.u32 %s1400_s20, 4  ;;  %s1401_s1 = smov 64   ;;  %s93_s21 = int_to_ptr.vmem [resolvable:$true] %s92_s21 }
  0x18   :  { %s1402_s22 = smov 4   ;;  %s115_s24 = sshll.u32 %s1649_s8, 4  ;;  %s116_s24 = int_to_ptr.hbm [resolvable:$true] %s115_s24 }
  0x19   :  { %98 = dma.hbm_to_vmem [thread:$0]  %s91_s18, 5120, %s93_s21, [#allocation12], %s1401_s1, %s1401_s1, %s1402_s22  }
  0x1a   :  { %s1403_s25 = smov [#allocation16]  }
  0x1b   :  { %s117_s3 = sshll.u32 %s1403_s25, 4  ;;  %s118_s3 = int_to_ptr.vmem [resolvable:$true] %s117_s3 }
  0x1c   :  { %120 = dma.hbm_to_vmem [thread:$0]  %s116_s24, 128, %s118_s3, [#allocation15]  }
  0x1d   :  { %1381 = dma.done.wait [#allocation3], 128  }
  0x1e   :  { %1382 = vsyncadd [#allocation3], 4294967168 }
  0x1f   :  { %1383 = dma.done.wait [#allocation6], 256  }
  0x20   :  { %1384 = vsyncadd [#allocation6], 4294967040 }
  0x21   :  { %1385 = dma.done.wait [#allocation9], 256  }
  0x22   :  { %1386 = vsyncadd [#allocation9], 4294967040 }
  0x23   :  { %1387 = dma.done.wait [#allocation12], 5248  }
  0x24   :  { %1388 = vsyncadd [#allocation12], 4294962048 }
  0x25   :  { %1389 = dma.done.wait [#allocation15], 256  }
  0x26   :  { %1390 = vsyncadd [#allocation15], 4294967040  ;;  %v1482_v0 = vld [vmem:[#allocation13 + $0x78] sm:$0xff]  ;;  %v1485_v2 = vld [vmem:[#allocation13 + $0x70] sm:$0xff]  ;;  %s1404_s6 = smov [#allocation17]   ;;  %s848_s28 = sshll.u32 %s1650_s9, 4  ;;  %s849_s28 = int_to_ptr.hbm [resolvable:$true] %s848_s28 }
  0x27   :  { %v1034_v1 = vld [vmem:[#allocation13 + $0x38] sm:$0xff]  ;;  %373 = vmatpush.bf16.msra.mxu1 %v1482_v0  ;;  %v1033_v3 = vld [vmem:[#allocation13 + $0x30] sm:$0xff]  ;;  %v1487_v4 = vld [vmem:[#allocation13 + $0x68] sm:$0xff]  ;;  %s846_s8 = sshll.u32 %s1404_s6, 4  ;;  %s847_s8 = int_to_ptr.vmem [resolvable:$true] %s846_s8 }
  0x28   :  { %306 = vmatpush.bf16.msra.mxu0 %v1034_v1  ;;  %v1032_v5 = vld [vmem:[#allocation13 + $0x28] sm:$0xff]  ;;  %v1491_v6 = vld [vmem:[#allocation13 + $0x60] sm:$0xff]  ;;  %v1494_v8 = vld [vmem:[#allocation13 + $0x58] sm:$0xff] }
  0x29   :  { %v1031_v7 = vld [vmem:[#allocation13 + $0x20] sm:$0xff]  ;;  %v1030_v9 = vld [vmem:[#allocation13 + $0x18] sm:$0xff]  ;;  %v1497_v10 = vld [vmem:[#allocation13 + $0x50] sm:$0xff] }
  0x2a   :  { %v1029_v11 = vld [vmem:[#allocation13 + $0x10] sm:$0xff]  ;;  %v1500_v12 = vld [vmem:[#allocation13 + $0x48] sm:$0xff]  ;;  %v1503_v14 = vld [vmem:[#allocation13 + $0x40] sm:$0xff] }
  0x2b   :  { %374 = vmatpush.bf16.msra.mxu1 %v1485_v2  ;;  %v1028_v13 = vld [vmem:[#allocation13 + $0x8] sm:$0xff]  ;;  %v1505_v15 = vld [vmem:[#allocation5] sm:$0xff]  ;;  %v1027_v16 = vld [vmem:[#allocation13] sm:$0xff] }
  0x2c   :  { %307 = vmatpush.bf16.msra.mxu0 %v1033_v3  ;;  %v1507_v17 = vld [vmem:[#allocation2] sm:$0xff]  ;;  %v324_v18 = vpack.c.bf16 %v1505_v15, %v1505_v15  ;;  %v1514_v20 = vld [vmem:[#allocation7] sm:$0xff]  ;;  %v1079_v24 = vld [vmem:[#allocation16 + $0x1] ss:$0 sm:$0xff] }
  0x2d   :  { %v257_v19 = vpack.c.bf16 %v1507_v17, %v1507_v17  ;;  %v592_v21 = vpack.c.bf16 %v1514_v20, %v1514_v20  ;;  %v1080_v25 = vld [vmem:[#allocation16] ss:$0 sm:$0xff]  ;;  %v1518_v27 = vld [vmem:[#allocation13 + $0xb8] sm:$0xff]  ;;  %v1521_v33 = vld [vmem:[#allocation13 + $0xb0] sm:$0xff]  ;;  %v631_v59 = vsub.f32 %v1514_v20, %v1507_v17 }
  0x2e   :  { %440 = vmatpush.bf16.msra.mxu2 %v1518_v27  ;;  %v1081_v35 = vld [vmem:[#allocation14] ss:$0 sm:$0xff]  ;;  %v1524_v39 = vld [vmem:[#allocation13 + $0xa8] sm:$0xff]  ;;  %v1530_v41 = vld [vmem:[#allocation13 + $0x98] sm:$0xff] }
  0x2f   :  { %375 = vmatpush.bf16.msra.mxu1 %v1487_v4  ;;  %v1527_v40 = vld [vmem:[#allocation13 + $0xa0] sm:$0xff]  ;;  %v1533_v42 = vld [vmem:[#allocation13 + $0x90] sm:$0xff]  ;;  %v1536_v43 = vld [vmem:[#allocation13 + $0x88] sm:$0xff] }
  0x30   :  { %308 = vmatpush.bf16.msra.mxu0 %v1032_v5  ;;  %v1539_v44 = vld [vmem:[#allocation13 + $0x80] sm:$0xff]  ;;  %v1544_v45 = vld [vmem:[#allocation8] sm:$0xff] }
  0x31   :  { %v391_v46 = vpack.c.bf16 %v1544_v45, %v1544_v45  ;;  %v1576_v20 = vld [vmem:[#allocation13 + $0xe0] sm:$0xff] }
  0x32   :  { %441 = vmatpush.bf16.msra.mxu2 %v1521_v33 }
  0x33   :  { %376 = vmatpush.bf16.msra.mxu1 %v1491_v6 }
  0x34   :  { %309 = vmatpush.bf16.msra.mxu0 %v1031_v7 }
  0x36   :  { %442 = vmatpush.bf16.msra.mxu2 %v1524_v39 }
  0x37   :  { %377 = vmatpush.bf16.msra.mxu1 %v1494_v8 }
  0x38   :  { %310 = vmatpush.bf16.msra.mxu0 %v1030_v9 }
  0x3a   :  { %443 = vmatpush.bf16.msra.mxu2 %v1527_v40 }
  0x3b   :  { %378 = vmatpush.bf16.msra.mxu1 %v1497_v10 }
  0x3c   :  { %311 = vmatpush.bf16.msra.mxu0 %v1029_v11 }
  0x3e   :  { %444 = vmatpush.bf16.msra.mxu2 %v1530_v41 }
  0x3f   :  { %379 = vmatpush.bf16.msra.mxu1 %v1500_v12 }
  0x40   :  { %312 = vmatpush.bf16.msra.mxu0 %v1028_v13 }
  0x42   :  { %445 = vmatpush.bf16.msra.mxu2 %v1533_v42 }
  0x43   :  { %380 = vmatpush.bf16.msra.mxu1 %v1503_v14 }
  0x44   :  { %313 = vmatpush.bf16.msra.mxu0 %v1027_v16 }
  0x46   :  { %381 = vmatmul.bf16.vlgmr.msra.gmra.mxu1 %v324_v18  ;;  %446 = vmatpush.bf16.msra.mxu2 %v1536_v43 }
  0x47   :  { %593 = vmatpush.bf16.msrb.mxu1 %v1034_v1  ;;  %314 = vmatmul.bf16.vlgmr.msra.gmra.mxu0 %v257_v19  ;;  %v1573_v19 = vld [vmem:[#allocation13 + $0xe8] sm:$0xff] }
  0x4a   :  { %447 = vmatpush.bf16.msra.mxu2 %v1539_v44 }
  0x4b   :  { %594 = vmatpush.bf16.msrb.mxu1 %v1033_v3 }
  0x4d   :  { %448 = vmatmul.bf16.vlgmr.msra.gmra.mxu2 %v391_v46 }
  0x4e   :  { %635 = vmatpush.bf16.msrb.mxu2 %v1482_v0 }
  0x4f   :  { %595 = vmatpush.bf16.msrb.mxu1 %v1032_v5 }
  0x52   :  { %636 = vmatpush.bf16.msrb.mxu2 %v1485_v2 }
  0x53   :  { %596 = vmatpush.bf16.msrb.mxu1 %v1031_v7  ;;  %v1082_v7 = vld [vmem:[#allocation16 + $0x2] ss:$0 sm:$0xff] }
  0x56   :  { %637 = vmatpush.bf16.msrb.mxu2 %v1487_v4 }
  0x57   :  { %597 = vmatpush.bf16.msrb.mxu1 %v1030_v9 }
  0x5a   :  { %638 = vmatpush.bf16.msrb.mxu2 %v1491_v6 }
  0x5b   :  { %598 = vmatpush.bf16.msrb.mxu1 %v1029_v11  ;;  %v1567_v11 = vld [vmem:[#allocation13 + $0xf8] sm:$0xff] }
  0x5c   :  { %507 = vmatpush.bf16.msra.mxu3 %v1567_v11 }
  0x5e   :  { %639 = vmatpush.bf16.msrb.mxu2 %v1494_v8 }
  0x5f   :  { %599 = vmatpush.bf16.msrb.mxu1 %v1028_v13 }
  0x62   :  { %640 = vmatpush.bf16.msrb.mxu2 %v1497_v10 }
  0x63   :  { %600 = vmatpush.bf16.msrb.mxu1 %v1027_v16 }
  0x66   :  { %601 = vmatmul.bf16.vlgmr.msrb.gmra.mxu1 %v592_v21  ;;  %641 = vmatpush.bf16.msrb.mxu2 %v1500_v12  ;;  %v1570_v12 = vld [vmem:[#allocation13 + $0xf0] sm:$0xff]  ;;  %v1579_v21 = vld [vmem:[#allocation13 + $0xd8] sm:$0xff] }
  0x67   :  { %508 = vmatpush.bf16.msra.mxu3 %v1570_v12 }
  0x6a   :  { %642 = vmatpush.bf16.msrb.mxu2 %v1503_v14  ;;  %v1083_v14 = vld [vmem:[#allocation14 + $0x1] ss:$0 sm:$0xff] }
  0x6b   :  { %509 = vmatpush.bf16.msra.mxu3 %v1573_v19 }
  0x6f   :  { %510 = vmatpush.bf16.msra.mxu3 %v1576_v20 }
  0x73   :  { %511 = vmatpush.bf16.msra.mxu3 %v1579_v21 }
  0xc3   :  { %v382_v22 = vpop.f32.mrf.mxu1 }
  0xc4   :  { %1089 = vtanh.f32 %v382_v22  ;;  %v315_v23 = vpop.f32.mrf.mxu0  ;;  %v1582_v22 = vld [vmem:[#allocation13 + $0xd0] sm:$0xff] }
  0xc5   :  { %1091 = vtanh.f32 %v315_v23  ;;  %512 = vmatpush.bf16.msra.mxu3 %v1582_v22  ;;  %v1585_v23 = vld [vmem:[#allocation13 + $0xc8] sm:$0xff] }
  0xc9   :  { %513 = vmatpush.bf16.msra.mxu3 %v1585_v23 }
  0xca   :  { %v1090_v26 = vpop.eup %1089 }
  0xcb   :  { %v1092_v28 = vpop.eup %1091  ;;  %v384_v29 = vpop.f32.mrf.mxu1  ;;  %v388_v30 = vmul.f32 %v1090_v26, %v1079_v24  ;;  %v1588_v24 = vld [vmem:[#allocation13 + $0xc0] sm:$0xff] }
  0xcc   :  { %v317_v31 = vpop.f32.mrf.mxu0  ;;  %v321_v32 = vmul.f32 %v1092_v28, %v1080_v25  ;;  %v1593_v25 = vld [vmem:[#allocation10] sm:$0xff] }
  0xcd   :  { %389 = vadd.xlane.f32.xlu1 %v388_v30  ;;  %514 = vmatpush.bf16.msra.mxu3 %v1588_v24  ;;  %v458_v26 = vpack.c.bf16 %v1593_v25, %v1593_v25 }
  0xce   :  { %322 = vadd.xlane.f32.xlu0 %v321_v32 }
  0xd0   :  { %v449_v6 = vpop.f32.mrf.mxu2  ;;  %515 = vmatmul.bf16.vlgmr.msra.gmra.mxu3 %v458_v26 }
  0xd1   :  { %677 = vmatpush.bf16.msrb.mxu3 %v1518_v27 }
  0xd5   :  { %678 = vmatpush.bf16.msrb.mxu3 %v1521_v33 }
  0xd8   :  { %v451_v9 = vpop.f32.mrf.mxu2 }
  0xd9   :  { %679 = vmatpush.bf16.msrb.mxu3 %v1524_v39 }
  0xdd   :  { %680 = vmatpush.bf16.msrb.mxu3 %v1527_v40 }
  0xe1   :  { %681 = vmatpush.bf16.msrb.mxu3 %v1530_v41 }
  0xe3   :  { %v602_v34 = vpop.f32.mrf.mxu1 }
  0xe4   :  { %1093 = vtanh.f32 %v602_v34 }
  0xe5   :  { %682 = vmatpush.bf16.msrb.mxu3 %v1533_v42 }
  0xe9   :  { %683 = vmatpush.bf16.msrb.mxu3 %v1536_v43 }
  0xea   :  { %v1094_v36 = vpop.eup %1093 }
  0xeb   :  { %v604_v37 = vpop.f32.mrf.mxu1  ;;  %v608_v38 = vmul.f32 %v1094_v36, %v1081_v35 }
  0xed   :  { %609 = vadd.xlane.f32.xlu0 %v608_v38  ;;  %684 = vmatpush.bf16.msrb.mxu3 %v1539_v44 }
 0x140   :  { %v390_v28 = vpop.xlane.xlu1 %389 }
 0x141   :  { %v323_v47 = vpop.xlane.xlu0 %322 }
 0x160   :  { %v610_v48 = vpop.xlane.xlu0 %609 }
 0x161   :  { %v611_v49 = vadd.f32 %v610_v48, %v323_v47 }
 0x163   :  { %v1022_v50 = vmul.f32 -1.442695, %v611_v49 }
 0x165   :  { %1095 = vpow2.f32 %v1022_v50 }
 0x16b   :  { %v1096_v51 = vpop.eup %1095 }
 0x16c   :  { %v615_v52 = vadd.f32 1.0, %v1096_v51 }
 0x16e   :  { %1097 = vrcp.f32 %v615_v52  ;;  %v627_v56 = vand.u32 2147483648, %v615_v52  ;;  %v625_v58 = vand.u32 2147483647, %v615_v52  ;;  %vm621_vm1 = vweird.f32 %v615_v52 }
 0x170   :  { %v628_v61 = vor.u32 1.1754944e-38, %v627_v56  ;;  %vm626_vm3 = vcmp.eq.f32.partialorder %v625_v58, 8.507059e+37  ;;  %v1065_v58 = vld [vmem:[#allocation13 + $0x130] sm:$0xff] }
 0x174   :  { %v1098_v53 = vpop.eup %1097 }
 0x175   :  { %v617_v54 = vmul.f32 %v1098_v53, %v615_v52  ;;  %vm622_vm0 = vweird.f32 %v1098_v53 }
 0x176   :  { %vm623_vm2 = vmor %vm621_vm1, %vm622_vm0 }
 0x177   :  { %v618_v55 = vsub.f32 1.0, %v617_v54  ;;  %v1084_v54 = vld [vmem:[#allocation16 + $0x3] ss:$0 sm:$0xff] }
 0x179   :  { %v619_v57 = vmul.f32 %v1098_v53, %v618_v55 }
 0x17b   :  { %v620_v60 = vadd.f32 %v1098_v53, %v619_v57  ;;  %v1066_v57 = vld [vmem:[#allocation13 + $0x138] sm:$0xff] }
 0x17c   :  { %574 = vmatpush.bf16.msrb.mxu0 %v1066_v57  ;;  %761 = vmatpush.bf16.msra.mxu1 %v1066_v57 }
 0x17d   :  { %v624_v62 = vsel %vm623_vm2, %v1098_v53, %v620_v60  ;;  %v516_v53 = vpop.f32.mrf.mxu3  ;;  %v1085_v60 = vld [vmem:[#allocation14 + $0x2] ss:$0 sm:$0xff] }
 0x17e   :  { %v629_v63 = vsel %vm626_vm3, %v628_v61, %v624_v62 }
 0x17f   :  { %v632_v0 = vmul.f32 %v631_v59, %v629_v63  ;;  %v802_v1 = vmul.f32 1.442695, %v629_v63 }
 0x180   :  { %575 = vmatpush.bf16.msrb.mxu0 %v1065_v58  ;;  %762 = vmatpush.bf16.msra.mxu1 %v1065_v58 }
 0x181   :  { %v1557_v2 = vadd.f32 %v632_v0, %v1507_v17  ;;  %1099 = vpow2.f32 %v802_v1  ;;  %v1064_v0 = vld [vmem:[#allocation13 + $0x128] sm:$0xff]  ;;  %v1063_v1 = vld [vmem:[#allocation13 + $0x120] sm:$0xff] }
 0x182   :  { %1101 = vtanh.f32 %v449_v6  ;;  %v1619_v6 = vld [vmem:[#allocation11] sm:$0xff] }
 0x183   :  { %v634_v3 = vpack.c.bf16 %v1557_v2, %v1557_v2  ;;  %v673_v42 = vsub.f32 %v1557_v2, %v1505_v15 }
 0x184   :  { %576 = vmatpush.bf16.msrb.mxu0 %v1064_v0  ;;  %763 = vmatpush.bf16.msra.mxu1 %v1064_v0 }
 0x185   :  { %643 = vmatmul.bf16.vlgmr.msrb.gmra.mxu2 %v634_v3  ;;  %v1061_v3 = vld [vmem:[#allocation13 + $0x110] sm:$0xff] }
 0x187   :  { %v1561_v4 = vpop.eup %1099 }
 0x188   :  { %v1565_v5 = vmul.f32 %v1561_v4, %v1557_v2  ;;  %v1102_v8 = vpop.eup %1101  ;;  %577 = vmatpush.bf16.msrb.mxu0 %v1063_v1  ;;  %v1062_v2 = vld [vmem:[#allocation13 + $0x118] sm:$0xff]  ;;  %764 = vmatpush.bf16.msra.mxu1 %v1063_v1 }
 0x189   :  { %v455_v10 = vmul.f32 %v1102_v8, %v1082_v7  ;;  %v525_v7 = vpack.c.bf16 %v1619_v6, %v1619_v6 }
 0x18b   :  { %456 = vadd.xlane.f32.xlu2 %v455_v10 }
 0x18c   :  { %578 = vmatpush.bf16.msrb.mxu0 %v1062_v2  ;;  %765 = vmatpush.bf16.msra.mxu1 %v1062_v2 }
 0x190   :  { %579 = vmatpush.bf16.msrb.mxu0 %v1061_v3  ;;  %766 = vmatpush.bf16.msra.mxu1 %v1061_v3 }
 0x1fe   :  { %v457_v8 = vpop.xlane.xlu2 %456 }
 0x208   :  { %v644_v13 = vpop.f32.mrf.mxu2 }
 0x209   :  { %1103 = vtanh.f32 %v644_v13 }
 0x20f   :  { %v1104_v16 = vpop.eup %1103 }
 0x210   :  { %v646_v17 = vpop.f32.mrf.mxu2  ;;  %v650_v18 = vmul.f32 %v1104_v16, %v1083_v14 }
 0x212   :  { %651 = vadd.xlane.f32.xlu1 %v650_v18 }
 0x285   :  { %v652_v27 = vpop.xlane.xlu1 %651 }
 0x286   :  { %v653_v29 = vadd.f32 %v652_v27, %v390_v28 }
 0x288   :  { %v1023_v30 = vmul.f32 -1.442695, %v653_v29 }
 0x28a   :  { %1105 = vpow2.f32 %v1023_v30 }
 0x290   :  { %v1106_v31 = vpop.eup %1105 }
 0x291   :  { %v657_v32 = vadd.f32 1.0, %v1106_v31 }
 0x293   :  { %1107 = vrcp.f32 %v657_v32  ;;  %v669_v36 = vand.u32 2147483648, %v657_v32  ;;  %v667_v38 = vand.u32 2147483647, %v657_v32  ;;  %vm663_vm5 = vweird.f32 %v657_v32 }
 0x295   :  { %v670_v40 = vor.u32 1.1754944e-38, %v669_v36  ;;  %vm668_vm7 = vcmp.eq.f32.partialorder %v667_v38, 8.507059e+37  ;;  %v1086_v36 = vld [vmem:[#allocation16 + $0x4] ss:$0 sm:$0xff] }
 0x299   :  { %v1108_v33 = vpop.eup %1107 }
 0x29a   :  { %v659_v34 = vmul.f32 %v1108_v33, %v657_v32  ;;  %vm664_vm4 = vweird.f32 %v1108_v33 }
 0x29b   :  { %vm665_vm6 = vmor %vm663_vm5, %vm664_vm4 }
 0x29c   :  { %v660_v35 = vsub.f32 1.0, %v659_v34 }
 0x29e   :  { %v661_v37 = vmul.f32 %v1108_v33, %v660_v35 }
 0x2a0   :  { %v662_v39 = vadd.f32 %v1108_v33, %v661_v37 }
 0x2a2   :  { %v666_v41 = vsel %vm665_vm6, %v1108_v33, %v662_v39 }
 0x2a3   :  { %v671_v43 = vsel %vm668_vm7, %v670_v40, %v666_v41  ;;  %v1087_v41 = vld [vmem:[#allocation14 + $0x3] ss:$0 sm:$0xff] }
 0x2a4   :  { %v674_v44 = vmul.f32 %v673_v42, %v671_v43  ;;  %v804_v46 = vmul.f32 1.442695, %v671_v43 }
 0x2a6   :  { %v1606_v47 = vadd.f32 %v674_v44, %v1505_v15  ;;  %1109 = vpow2.f32 %v804_v46  ;;  %v518_v15 = vpop.f32.mrf.mxu3 }
 0x2a7   :  { %1111 = vtanh.f32 %v516_v53 }
 0x2a8   :  { %v676_v48 = vpack.c.bf16 %v1606_v47, %v1606_v47 }
 0x2aa   :  { %685 = vmatmul.bf16.vlgmr.msrb.gmra.mxu3 %v676_v48 }
 0x2ac   :  { %v1110_v49 = vpop.eup %1109 }
 0x2ad   :  { %v1611_v50 = vadd.f32 %v1110_v49, %v1561_v4  ;;  %v831_v51 = vmul.f32 %v1110_v49, %v1606_v47  ;;  %v1112_v55 = vpop.eup %1111  ;;  %v1060_v4 = vld [vmem:[#allocation13 + $0x108] sm:$0xff] }
 0x2ae   :  { %v522_v56 = vmul.f32 %v1112_v55, %v1084_v54  ;;  %580 = vmatpush.bf16.msrb.mxu0 %v1060_v4  ;;  %767 = vmatpush.bf16.msra.mxu1 %v1060_v4 }
 0x2af   :  { %v1615_v52 = vadd.f32 %v831_v51, %v1565_v5  ;;  %v1059_v5 = vld [vmem:[#allocation13 + $0x100] sm:$0xff] }
 0x2b0   :  { %523 = vadd.xlane.f32.xlu0 %v522_v56 }
 0x2b2   :  { %581 = vmatpush.bf16.msrb.mxu0 %v1059_v5  ;;  %768 = vmatpush.bf16.msra.mxu1 %v1059_v5 }
 0x2b5   :  { %582 = vmatmul.bf16.vlgmr.msrb.gmra.mxu0 %v525_v7  ;;  %v1088_v7 = vld [vmem:[#allocation14 + $0x4] ss:$0 sm:$0xff] }
 0x2b6   :  { %719 = vmatpush.bf16.msra.mxu0 %v1567_v11 }
 0x2ba   :  { %720 = vmatpush.bf16.msra.mxu0 %v1570_v12 }
 0x2be   :  { %721 = vmatpush.bf16.msra.mxu0 %v1573_v19 }
 0x2c2   :  { %722 = vmatpush.bf16.msra.mxu0 %v1576_v20 }
 0x2c6   :  { %723 = vmatpush.bf16.msra.mxu0 %v1579_v21 }
 0x2ca   :  { %724 = vmatpush.bf16.msra.mxu0 %v1582_v22 }
 0x2ce   :  { %725 = vmatpush.bf16.msra.mxu0 %v1585_v23  ;;  %v715_v23 = vsub.f32 %v1606_v47, %v1544_v45 }
 0x2d2   :  { %726 = vmatpush.bf16.msra.mxu0 %v1588_v24 }
 0x323   :  { %v524_v44 = vpop.xlane.xlu0 %523 }
 0x32d   :  { %v686_v59 = vpop.f32.mrf.mxu3 }
 0x32e   :  { %1113 = vtanh.f32 %v686_v59 }
 0x332   :  { %v583_v35 = vpop.f32.mrf.mxu0 }
 0x334   :  { %v1114_v61 = vpop.eup %1113 }
 0x335   :  { %v688_v62 = vpop.f32.mrf.mxu3  ;;  %v692_v63 = vmul.f32 %v1114_v61, %v1085_v60 }
 0x337   :  { %693 = vadd.xlane.f32.xlu2 %v692_v63 }
 0x33a   :  { %v585_v38 = vpop.f32.mrf.mxu0 }
 0x3aa   :  { %v694_v9 = vpop.xlane.xlu2 %693 }
 0x3ab   :  { %v695_v10 = vadd.f32 %v694_v9, %v457_v8 }
 0x3ad   :  { %v1024_v11 = vmul.f32 -1.442695, %v695_v10 }
 0x3af   :  { %1115 = vpow2.f32 %v1024_v11 }
 0x3b5   :  { %v1116_v12 = vpop.eup %1115 }
 0x3b6   :  { %v699_v13 = vadd.f32 1.0, %v1116_v12 }
 0x3b8   :  { %1117 = vrcp.f32 %v699_v13  ;;  %v711_v18 = vand.u32 2147483648, %v699_v13  ;;  %v709_v20 = vand.u32 2147483647, %v699_v13  ;;  %vm705_vm9 = vweird.f32 %v699_v13 }
 0x3ba   :  { %v712_v22 = vor.u32 1.1754944e-38, %v711_v18  ;;  %vm710_vm11 = vcmp.eq.f32.partialorder %v709_v20, 8.507059e+37 }
 0x3be   :  { %v1118_v14 = vpop.eup %1117 }
 0x3bf   :  { %v701_v16 = vmul.f32 %v1118_v14, %v699_v13  ;;  %vm706_vm8 = vweird.f32 %v1118_v14 }
 0x3c0   :  { %vm707_vm10 = vmor %vm705_vm9, %vm706_vm8 }
 0x3c1   :  { %v702_v17 = vsub.f32 1.0, %v701_v16 }
 0x3c3   :  { %v703_v19 = vmul.f32 %v1118_v14, %v702_v17 }
 0x3c5   :  { %v704_v21 = vadd.f32 %v1118_v14, %v703_v19 }
 0x3c7   :  { %v708_v24 = vsel %vm707_vm10, %v1118_v14, %v704_v21 }
 0x3c8   :  { %v713_v26 = vsel %vm710_vm11, %v712_v22, %v708_v24 }
 0x3c9   :  { %v716_v28 = vmul.f32 %v715_v23, %v713_v26  ;;  %v806_v27 = vmul.f32 1.442695, %v713_v26 }
 0x3cb   :  { %v717_v29 = vadd.f32 %v716_v28, %v1544_v45  ;;  %1119 = vpow2.f32 %v806_v27 }
 0x3cc   :  { %1121 = vtanh.f32 %v583_v35 }
 0x3cd   :  { %v718_v30 = vpack.c.bf16 %v717_v29, %v717_v29  ;;  %v757_v59 = vsub.f32 %v717_v29, %v1593_v25 }
 0x3cf   :  { %727 = vmatmul.bf16.vlgmr.msra.gmra.mxu0 %v718_v30 }
 0x3d1   :  { %v1120_v31 = vpop.eup %1119 }
 0x3d2   :  { %v813_v32 = vadd.f32 %v1120_v31, %v1611_v50  ;;  %v833_v33 = vmul.f32 %v1120_v31, %v717_v29  ;;  %v1122_v37 = vpop.eup %1121 }
 0x3d3   :  { %v589_v39 = vmul.f32 %v1122_v37, %v1086_v36 }
 0x3d4   :  { %v834_v34 = vadd.f32 %v833_v33, %v1615_v52 }
 0x3d5   :  { %590 = vadd.xlane.f32.xlu2 %v589_v39 }
 0x448   :  { %v591_v11 = vpop.xlane.xlu2 %590 }
 0x44c   :  { %v728_v40 = vpop.f32.mrf.mxu0 }
 0x44d   :  { %1123 = vtanh.f32 %v728_v40 }
 0x453   :  { %v1124_v45 = vpop.eup %1123 }
 0x454   :  { %v730_v42 = vpop.f32.mrf.mxu0  ;;  %v734_v43 = vmul.f32 %v1124_v45, %v1087_v41 }
 0x456   :  { %735 = vadd.xlane.f32.xlu1 %v734_v43 }
 0x4c9   :  { %v736_v46 = vpop.xlane.xlu1 %735 }
 0x4ca   :  { %v737_v47 = vadd.f32 %v736_v46, %v524_v44 }
 0x4cc   :  { %v1025_v48 = vmul.f32 -1.442695, %v737_v47 }
 0x4ce   :  { %1125 = vpow2.f32 %v1025_v48 }
 0x4d4   :  { %v1126_v49 = vpop.eup %1125 }
 0x4d5   :  { %v741_v50 = vadd.f32 1.0, %v1126_v49 }
 0x4d7   :  { %1127 = vrcp.f32 %v741_v50  ;;  %v753_v54 = vand.u32 2147483648, %v741_v50  ;;  %v751_v15 = vand.u32 2147483647, %v741_v50  ;;  %vm747_vm13 = vweird.f32 %v741_v50 }
 0x4d9   :  { %v754_v57 = vor.u32 1.1754944e-38, %v753_v54  ;;  %vm752_vm15 = vcmp.eq.f32.partialorder %v751_v15, 8.507059e+37 }
 0x4dd   :  { %v1128_v51 = vpop.eup %1127 }
 0x4de   :  { %v743_v52 = vmul.f32 %v1128_v51, %v741_v50  ;;  %vm748_vm12 = vweird.f32 %v1128_v51 }
 0x4df   :  { %vm749_vm14 = vmor %vm747_vm13, %vm748_vm12 }
 0x4e0   :  { %v744_v53 = vsub.f32 1.0, %v743_v52 }
 0x4e2   :  { %v745_v55 = vmul.f32 %v1128_v51, %v744_v53 }
 0x4e4   :  { %v746_v56 = vadd.f32 %v1128_v51, %v745_v55 }
 0x4e6   :  { %v750_v58 = vsel %vm749_vm14, %v1128_v51, %v746_v56 }
 0x4e7   :  { %v755_v60 = vsel %vm752_vm15, %v754_v57, %v750_v58 }
 0x4e8   :  { %v758_v61 = vmul.f32 %v757_v59, %v755_v60  ;;  %v808_v62 = vmul.f32 1.442695, %v755_v60 }
 0x4ea   :  { %v759_v63 = vadd.f32 %v758_v61, %v1593_v25  ;;  %1129 = vpow2.f32 %v808_v62 }
 0x4ec   :  { %v760_v0 = vpack.c.bf16 %v759_v63, %v759_v63  ;;  %v799_v29 = vsub.f32 %v759_v63, %v1619_v6 }
 0x4ee   :  { %769 = vmatmul.bf16.vlgmr.msra.gmra.mxu1 %v760_v0 }
 0x4f0   :  { %v1130_v1 = vpop.eup %1129 }
 0x4f1   :  { %v814_v2 = vadd.f32 %v1130_v1, %v813_v32  ;;  %v835_v3 = vmul.f32 %v1130_v1, %v759_v63 }
 0x4f3   :  { %v836_v4 = vadd.f32 %v835_v3, %v834_v34 }
 0x56b   :  { %v770_v5 = vpop.f32.mrf.mxu1 }
 0x56c   :  { %1131 = vtanh.f32 %v770_v5 }
 0x572   :  { %v1132_v8 = vpop.eup %1131 }
 0x573   :  { %v772_v9 = vpop.f32.mrf.mxu1  ;;  %v776_v10 = vmul.f32 %v1132_v8, %v1088_v7 }
 0x575   :  { %777 = vadd.xlane.f32.xlu0 %v776_v10 }
 0x5e8   :  { %v778_v12 = vpop.xlane.xlu0 %777 }
 0x5e9   :  { %v779_v13 = vadd.f32 %v778_v12, %v591_v11 }
 0x5eb   :  { %v1026_v14 = vmul.f32 -1.442695, %v779_v13 }
 0x5ed   :  { %1133 = vpow2.f32 %v1026_v14 }
 0x5f3   :  { %v1134_v25 = vpop.eup %1133 }
 0x5f4   :  { %v783_v16 = vadd.f32 1.0, %v1134_v25 }
 0x5f6   :  { %1135 = vrcp.f32 %v783_v16  ;;  %v795_v20 = vand.u32 2147483648, %v783_v16  ;;  %v793_v22 = vand.u32 2147483647, %v783_v16  ;;  %vm789_vm1 = vweird.f32 %v783_v16 }
 0x5f8   :  { %v796_v24 = vor.u32 1.1754944e-38, %v795_v20  ;;  %vm794_vm3 = vcmp.eq.f32.partialorder %v793_v22, 8.507059e+37 }
 0x5fc   :  { %v1136_v17 = vpop.eup %1135 }
 0x5fd   :  { %v785_v18 = vmul.f32 %v1136_v17, %v783_v16  ;;  %vm790_vm0 = vweird.f32 %v1136_v17 }
 0x5fe   :  { %vm791_vm2 = vmor %vm789_vm1, %vm790_vm0 }
 0x5ff   :  { %v786_v19 = vsub.f32 1.0, %v785_v18 }
 0x601   :  { %v787_v21 = vmul.f32 %v1136_v17, %v786_v19 }
 0x603   :  { %v788_v23 = vadd.f32 %v1136_v17, %v787_v21 }
 0x605   :  { %v792_v26 = vsel %vm791_vm2, %v1136_v17, %v788_v23 }
 0x606   :  { %v797_v28 = vsel %vm794_vm3, %v796_v24, %v792_v26 }
 0x607   :  { %v810_v27 = vmul.f32 1.442695, %v797_v28  ;;  %v800_v30 = vmul.f32 %v799_v29, %v797_v28 }
 0x609   :  { %1137 = vpow2.f32 %v810_v27  ;;  %v801_v31 = vadd.f32 %v800_v30, %v1619_v6 }
 0x60f   :  { %v1138_v32 = vpop.eup %1137 }
 0x610   :  { %v815_v33 = vadd.f32 %v1138_v32, %v814_v2  ;;  %v837_v34 = vmul.f32 %v1138_v32, %v801_v31 }
 0x612   :  { %1139 = vrcp.f32 %v815_v33  ;;  %v838_v35 = vadd.f32 %v837_v34, %v836_v4  ;;  %v827_v39 = vand.u32 2147483648, %v815_v33  ;;  %v825_v41 = vand.u32 2147483647, %v815_v33 }
 0x613   :  { %vm821_vm5 = vweird.f32 %v815_v33 }
 0x614   :  { %v828_v42 = vor.u32 1.1754944e-38, %v827_v39  ;;  %vm826_vm7 = vcmp.eq.f32.partialorder %v825_v41, 8.507059e+37 }
 0x618   :  { %v1140_v36 = vpop.eup %1139 }
 0x619   :  { %v817_v37 = vmul.f32 %v1140_v36, %v815_v33  ;;  %vm822_vm4 = vweird.f32 %v1140_v36 }
 0x61a   :  { %vm823_vm6 = vmor %vm821_vm5, %vm822_vm4 }
 0x61b   :  { %v818_v38 = vsub.f32 1.0, %v817_v37 }
 0x61d   :  { %v819_v40 = vmul.f32 %v1140_v36, %v818_v38 }
 0x61f   :  { %v820_v45 = vadd.f32 %v1140_v36, %v819_v40 }
 0x621   :  { %v824_v6 = vsel %vm823_vm6, %v1140_v36, %v820_v45 }
 0x622   :  { %v829_v43 = vsel %vm826_vm7, %v828_v42, %v824_v6 }
 0x623   :  { %v839_v44 = vmul.f32 %v838_v35, %v829_v43 }
 0x625   :  { %840 = vst [vmem:[#allocation17] sm:$0xff] %v839_v44 }
 0x626   :  { %851 = dma.vmem_to_hbm [thread:$0]  %s847_s8, 128, %s849_s28, [#allocation4]  }
 0x627   :  { %1391 = dma.done.wait [#allocation4], 128  }
 0x628   :  { %1392 = vsyncadd [#allocation4], 4294967168 }
 0x629   :  { %856 = vsyncpa [#allocation3], 1 }
 0x62a   :  { %857 = vsyncpa [#allocation6], 1 }
 0x62b   :  { %858 = vsyncpa [#allocation9], 1 }
 0x62c   :  { %859 = vsyncpa [#allocation12], 1 }
 0x62d   :  { %860 = vsyncpa [#allocation15], 1 }
 0x62e   :  { %861 = vsyncpa [#allocation4], 1 }

</bundles_post_ra>
